<compile_context>
chip_gen: v5e
topology: v5e:2x2
jax: 0.10.0
libtpu: 0.0.40
codegen_flags: <defaults>
</compile_context>

<pallas_src>
import jax
import jax.numpy as jnp
from jax.experimental import pallas as pl
from jax.experimental.pallas import tpu as pltpu


def _round_up(n, m):
    return (n + m - 1) // m * m


def conv_layer_kernel(x_ref, w_ref, shift_ref, o_ref, pool_ref):
    Bt, L, C = x_ref.shape
    Lc = L + 2                      # conv output length (circular pad=2, k=3, stride=1)
    Lout = o_ref.shape[1]
    Lc_pad = pool_ref.shape[1]
    cd = w_ref.dtype                # matmul operand dtype (bf16 in production, f32 demo)

    # ---- fused circular Conv1d(k=3) + BatchNorm(eval): one (Bt*L, 3C) @ (3C, C) matmul ----
    xc = x_ref[...].astype(cd)                                            # (Bt, L, C)
    wrap = xc[:, L - 2:L, :]                                              # x[L-2], x[L-1]
    tap0 = jnp.concatenate([wrap, xc[:, :L - 2, :]], axis=1)              # x[(t-2) mod L]
    tap1 = jnp.concatenate([wrap[:, 1:2, :], xc[:, :L - 1, :]], axis=1)   # x[(t-1) mod L]
    lhs = jnp.concatenate([tap0, tap1, xc], axis=-1)                      # (Bt, L, 3C), lane concat
    y = jnp.dot(lhs.reshape(Bt * L, 3 * C), w_ref[...],
                preferred_element_type=jnp.float32)                       # (Bt*L, C) f32 acc
    z = y + shift_ref[...]                                                # folded bias + BN shift
    # ELU(alpha=1); exp only on the clamped negative side (safe if dtypes ever narrow).
    e = jnp.where(z > 0, z, jnp.exp(jnp.minimum(z, 0.0)) - 1.0)
    e = e.reshape(Bt, L, C)

    # Conv rows L and L+1 equal rows 0 and 1 (fully circular conv), so the Lc-row
    # activation is [e, e[0:2]].  Bulk store is sublane-aligned at row offset 0.
    pool_ref[:, 0:L, :] = e
    pool_ref[:, L:L + 2, :] = e[:, 0:2, :]
    if Lc_pad > Lc:  # static; makes strided reads past the valid region harmless (odd L)
        pool_ref[:, Lc:Lc_pad, :] = jnp.full((Bt, Lc_pad - Lc, C), -3.0e38, jnp.float32)

    # ---- MaxPool1d(k=3, stride=2, padding=1) via strided sublane reads ----
    a = pool_ref[:, pl.ds(0, Lout, stride=2), :]          # e_full[2t]
    b = pool_ref[:, pl.ds(1, Lout, stride=2), :]          # e_full[2t+1]
    m = jnp.maximum(a, b)
    # left neighbor e_full[2t-1] = b[t-1]; for t=0 the window's left slot is pool padding,
    # so reuse m[0] (no -inf needed -> no NaN fragility).
    left = jnp.concatenate([m[:, 0:1, :], b[:, :Lout - 1, :]], axis=1)
    o_ref[...] = jnp.maximum(m, left)                     # (Bt, Lout, C) lane-dense store


def conv_layer(x, params, *, batch_block=None, compute_dtype=jnp.bfloat16):
    """x: (B, L, C) float32.

    params: conv_w (C,C,3), conv_b (C,), bn_gamma/bn_beta/bn_mean/bn_var (C,).
    compute_dtype affects only the conv matmul operands (accumulation stays f32).
    """
    B, L, C = x.shape
    assert L >= 2, "circular padding=2 requires L >= 2"
    if batch_block is None:
        # v7x: 2 TensorCores -> keep an even 'parallel' grid.  On single-TC v5e/v6e,
        # pass batch_block=B to run a single grid step (less per-step overhead).
        batch_block = B // 2 if (B % 2 == 0 and B >= 2) else B
    Bt = batch_block
    assert B % Bt == 0, "batch_block must divide batch"
    Lc = L + 2
    Lout = (Lc - 1) // 2 + 1
    Lc_pad = _round_up(Lc, 8)

    # --- fold Conv bias + BatchNorm(eval) into the fused weight / shift (once per call) ---
    # TODO(synk): cache the folded/fused parameters outside the per-call path in deployment.
    inv = jax.lax.rsqrt(params["bn_var"].astype(jnp.float32) + 1e-5)
    scale = params["bn_gamma"].astype(jnp.float32) * inv                        # (C,)
    shift = (params["conv_b"].astype(jnp.float32) * scale
             + params["bn_beta"].astype(jnp.float32)
             - params["bn_mean"].astype(jnp.float32) * scale).reshape(1, C)     # (1, C) f32
    w = params["conv_w"].astype(jnp.float32)                                    # (C_out, C_in, 3)
    # channels-last tap-k matrix is w[:, :, k].T; BN scale folds into output columns.
    w_fused = jnp.concatenate([w[:, :, 0].T, w[:, :, 1].T, w[:, :, 2].T], axis=0)
    w_fused = (w_fused * scale[None, :]).astype(compute_dtype)                  # (3C, C)

    return pl.pallas_call(
        conv_layer_kernel,
        out_shape=jax.ShapeDtypeStruct((B, Lout, C), jnp.float32),
        grid=(B // Bt,),
        in_specs=[
            pl.BlockSpec((Bt, L, C), lambda g: (g, 0, 0)),
            pl.BlockSpec((3 * C, C), lambda g: (0, 0)),
            pl.BlockSpec((1, C), lambda g: (0, 0)),
        ],
        out_specs=pl.BlockSpec((Bt, Lout, C), lambda g: (g, 0, 0)),
        scratch_shapes=[pltpu.VMEM((Bt, Lc_pad, C), jnp.float32)],   # pooled-activation scratch
        compiler_params=pltpu.CompilerParams(dimension_semantics=("parallel",)),
    )(x, w_fused, shift)


def conv_layer_reference(x, p):
    """Pure-JAX mirror of the PyTorch forward (BatchNorm in eval mode)."""
    B, L, C = x.shape
    Lc = L + 2
    hp = jax.lax.Precision.HIGHEST
    xc = jnp.transpose(x, (0, 2, 1))                                         # (B, C, L)
    xp = jnp.concatenate([xc[:, :, L - 2:], xc, xc[:, :, :2]], axis=-1)      # circular pad 2
    w = p["conv_w"]
    y = (jnp.einsum("oi,bit->bot", w[:, :, 0], xp[:, :, 0:Lc], precision=hp)
         + jnp.einsum("oi,bit->bot", w[:, :, 1], xp[:, :, 1:Lc + 1], precision=hp)
         + jnp.einsum("oi,bit->bot", w[:, :, 2], xp[:, :, 2:Lc + 2], precision=hp)
         + p["conv_b"][None, :, None])
    z = ((y - p["bn_mean"][None, :, None])
         * jax.lax.rsqrt(p["bn_var"][None, :, None] + 1e-5)
         * p["bn_gamma"][None, :, None] + p["bn_beta"][None, :, None])
    e = jnp.where(z > 0, z, jnp.exp(z) - 1.0)                                # ELU(alpha=1)
    neg = jnp.full((B, C, 1), -jnp.inf, x.dtype)
    P = jnp.concatenate([neg, e, neg], axis=-1)                              # pool padding=1
    Lout = (Lc - 1) // 2 + 1
    pooled = jnp.stack([jnp.max(P[:, :, 2 * t:2 * t + 3], axis=-1) for t in range(Lout)],
                       axis=-1)
    return jnp.transpose(pooled, (0, 2, 1))                                  # (B, Lout, C)


if __name__ == "__main__":
    # Small shapes consistent with the module: c_in = d_model = 128 (lane-dense), seq = 16.
    B, L, C = 4, 16, 128

    key = jax.random.PRNGKey(0)
    ks = jax.random.split(key, 7)
    params = {
        "conv_w": 0.1 * jax.random.normal(ks[0], (C, C, 3), jnp.float32),
        "conv_b": 0.1 * jax.random.normal(ks[1], (C,), jnp.float32),
        "bn_gamma": 1.0 + 0.05 * jax.random.normal(ks[2], (C,), jnp.float32),
        "bn_beta": 0.05 * jax.random.normal(ks[3], (C,), jnp.float32),
        "bn_mean": 0.1 * jax.random.normal(ks[4], (C,), jnp.float32),
        "bn_var": 1.0 + 0.3 * jax.random.uniform(ks[5], (C,), jnp.float32),
    }
    x = jax.random.normal(ks[6], (B, L, C), jnp.float32)

    ref = conv_layer_reference(x, params)
    Lout = ((L + 2) - 1) // 2 + 1

    # f32 matmul operands: tight check against the f32 reference.
    out_f32 = jax.block_until_ready(conv_layer(x, params, compute_dtype=jnp.float32))
    assert out_f32.shape == (B, Lout, C)
    assert jnp.allclose(out_f32, ref, atol=2e-4, rtol=2e-4), "f32 mismatch vs reference"

    # Production default: bf16 matmul operands, f32 accumulation + f32 elementwise math.
    out_bf16 = jax.block_until_ready(conv_layer(x, params))
    assert out_bf16.shape == (B, Lout, C)
    assert jnp.allclose(out_bf16, ref, atol=5e-2, rtol=5e-2), "bf16 mismatch vs reference"

    # TODO(synk): BatchNorm1d is implemented in eval mode (running stats folded); training-mode
    # batch statistics / running-stat updates are not implemented in-kernel.
    print("KERNEL_OK")
</pallas_src>

<mosaic_0001>
module attributes {stable_mosaic.version = 11 : i64} {
  func.func @conv_layer_kernel(%arg0: i32, %arg1: memref<2x16x128xf32, #tpu.memory_space<vmem>>, %arg2: memref<384x128xf32, #tpu.memory_space<vmem>>, %arg3: memref<1x128xf32, #tpu.memory_space<vmem>>, %arg4: memref<2x9x128xf32, #tpu.memory_space<vmem>>, %arg5: memref<2x24x128xf32, #tpu.memory_space<vmem>>) attributes {dimension_semantics = [#tpu.dimension_semantics<parallel>], iteration_bounds = array<i64: 2>, scalar_prefetch = 0 : i64, scratch_operands = 1 : i64, tpu.core_type = #tpu.core_type<tc>, window_params = [{transform_indices = @transform_0, window_bounds = array<i64: 2, 16, 128>}, {pipeline_mode = #tpu.pipeline_mode<synchronous>, transform_indices = @transform_1, window_bounds = array<i64: 384, 128>}, {pipeline_mode = #tpu.pipeline_mode<synchronous>, transform_indices = @transform_2, window_bounds = array<i64: 1, 128>}, {transform_indices = @transform_3, window_bounds = array<i64: 2, 9, 128>}]} {
    %c0 = arith.constant 0 : index
    %c0_0 = arith.constant 0 : index
    %c0_1 = arith.constant 0 : index
    %0 = vector.load %arg1[%c0, %c0_0, %c0_1] : memref<2x16x128xf32, #tpu.memory_space<vmem>>, vector<2x16x128xf32>
    %1 = vector.extract_strided_slice %0 {offsets = [0, 14, 0], sizes = [2, 2, 128], strides = [1, 1, 1]} : vector<2x16x128xf32> to vector<2x2x128xf32>
    %2 = vector.extract_strided_slice %0 {offsets = [0, 0, 0], sizes = [2, 14, 128], strides = [1, 1, 1]} : vector<2x16x128xf32> to vector<2x14x128xf32>
    %3 = tpu.concatenate %1, %2 in 1 : vector<2x2x128xf32>, vector<2x14x128xf32> -> vector<2x16x128xf32>
    %4 = vector.extract_strided_slice %1 {offsets = [0, 1, 0], sizes = [2, 1, 128], strides = [1, 1, 1]} : vector<2x2x128xf32> to vector<2x1x128xf32>
    %5 = vector.extract_strided_slice %0 {offsets = [0, 0, 0], sizes = [2, 15, 128], strides = [1, 1, 1]} : vector<2x16x128xf32> to vector<2x15x128xf32>
    %6 = tpu.concatenate %4, %5 in 1 : vector<2x1x128xf32>, vector<2x15x128xf32> -> vector<2x16x128xf32>
    %7 = tpu.concatenate %3, %6, %0 in 2 : vector<2x16x128xf32>, vector<2x16x128xf32>, vector<2x16x128xf32> -> vector<2x16x384xf32>
    %8 = vector.shape_cast %7 : vector<2x16x384xf32> to vector<32x384xf32>
    %c0_2 = arith.constant 0 : index
    %c0_3 = arith.constant 0 : index
    %9 = vector.load %arg2[%c0_2, %c0_3] : memref<384x128xf32, #tpu.memory_space<vmem>>, vector<384x128xf32>
    %cst = arith.constant dense<0.000000e+00> : vector<32x128xf32>
    %10 = tpu.matmul %8, %9, %cst {dimension_numbers = #tpu.dot_dimension_numbers<[1], [0], [0], [1], [0, 0, 1, 1], [], []>} : vector<32x384xf32>, vector<384x128xf32>, vector<32x128xf32> -> vector<32x128xf32>
    %c0_4 = arith.constant 0 : index
    %c0_5 = arith.constant 0 : index
    %11 = vector.load %arg3[%c0_4, %c0_5] : memref<1x128xf32, #tpu.memory_space<vmem>>, vector<1x128xf32>
    %12 = vector.broadcast %11 : vector<1x128xf32> to vector<32x128xf32>
    %13 = arith.addf %10, %12 : vector<32x128xf32>
    %cst_6 = arith.constant 0.000000e+00 : f32
    %14 = vector.broadcast %cst_6 : f32 to vector<32x128xf32>
    %15 = arith.cmpf ogt, %13, %14 : vector<32x128xf32>
    %cst_7 = arith.constant 0.000000e+00 : f32
    %16 = vector.broadcast %cst_7 : f32 to vector<32x128xf32>
    %17 = arith.minimumf %13, %16 : vector<32x128xf32>
    %18 = math.exp %17 : vector<32x128xf32>
    %cst_8 = arith.constant 1.000000e+00 : f32
    %19 = vector.broadcast %cst_8 : f32 to vector<32x128xf32>
    %20 = arith.subf %18, %19 : vector<32x128xf32>
    %21 = arith.select %15, %13, %20 : vector<32x128xi1>, vector<32x128xf32>
    %22 = vector.shape_cast %21 : vector<32x128xf32> to vector<2x16x128xf32>
    %c0_9 = arith.constant 0 : index
    %c0_10 = arith.constant 0 : index
    %c0_11 = arith.constant 0 : index
    %23 = vector.load %arg5[%c0_9, %c0_10, %c0_11] : memref<2x24x128xf32, #tpu.memory_space<vmem>>, vector<2x16x128xf32>
    tpu.vector_store %arg5[%c0_9, %c0_10, %c0_11], %22 {strides = array<i32>} : memref<2x24x128xf32, #tpu.memory_space<vmem>>, vector<2x16x128xf32>,
    %24 = vector.extract_strided_slice %22 {offsets = [0, 0, 0], sizes = [2, 2, 128], strides = [1, 1, 1]} : vector<2x16x128xf32> to vector<2x2x128xf32>
    %c0_12 = arith.constant 0 : index
    %c16 = arith.constant 16 : index
    %c0_13 = arith.constant 0 : index
    %25 = vector.load %arg5[%c0_12, %c16, %c0_13] : memref<2x24x128xf32, #tpu.memory_space<vmem>>, vector<2x2x128xf32>
    tpu.vector_store %arg5[%c0_12, %c16, %c0_13], %24 {strides = array<i32>} : memref<2x24x128xf32, #tpu.memory_space<vmem>>, vector<2x2x128xf32>,
    %cst_14 = arith.constant -3.000000e+38 : f32
    %26 = vector.broadcast %cst_14 : f32 to vector<2x6x128xf32>
    %c0_15 = arith.constant 0 : index
    %c18 = arith.constant 18 : index
    %c0_16 = arith.constant 0 : index
    %27 = vector.load %arg5[%c0_15, %c18, %c0_16] : memref<2x24x128xf32, #tpu.memory_space<vmem>>, vector<2x6x128xf32>
    tpu.vector_store %arg5[%c0_15, %c18, %c0_16], %26 {strides = array<i32>} : memref<2x24x128xf32, #tpu.memory_space<vmem>>, vector<2x6x128xf32>,
    %c0_17 = arith.constant 0 : index
    %c0_18 = arith.constant 0 : index
    %c0_19 = arith.constant 0 : index
    %28 = tpu.strided_load %arg5[%c0_17, %c0_18, %c0_19] {strides = array<i32: 1, 2, 1>} : memref<2x24x128xf32, #tpu.memory_space<vmem>>, vector<2x9x128xf32>
    %c0_20 = arith.constant 0 : index
    %c1 = arith.constant 1 : index
    %c0_21 = arith.constant 0 : index
    %29 = tpu.strided_load %arg5[%c0_20, %c1, %c0_21] {strides = array<i32: 1, 2, 1>} : memref<2x24x128xf32, #tpu.memory_space<vmem>>, vector<2x9x128xf32>
    %30 = arith.maximumf %28, %29 : vector<2x9x128xf32>
    %31 = vector.extract_strided_slice %30 {offsets = [0, 0, 0], sizes = [2, 1, 128], strides = [1, 1, 1]} : vector<2x9x128xf32> to vector<2x1x128xf32>
    %32 = vector.extract_strided_slice %29 {offsets = [0, 0, 0], sizes = [2, 8, 128], strides = [1, 1, 1]} : vector<2x9x128xf32> to vector<2x8x128xf32>
    %33 = tpu.concatenate %31, %32 in 1 : vector<2x1x128xf32>, vector<2x8x128xf32> -> vector<2x9x128xf32>
    %34 = arith.maximumf %30, %33 : vector<2x9x128xf32>
    %c0_22 = arith.constant 0 : index
    %c0_23 = arith.constant 0 : index
    %c0_24 = arith.constant 0 : index
    %35 = vector.load %arg4[%c0_22, %c0_23, %c0_24] : memref<2x9x128xf32, #tpu.memory_space<vmem>>, vector<2x9x128xf32>
    tpu.vector_store %arg4[%c0_22, %c0_23, %c0_24], %34 {strides = array<i32>} : memref<2x9x128xf32, #tpu.memory_space<vmem>>, vector<2x9x128xf32>,
    return
  }
  func.func @transform_0(%arg0: i32) -> (i32, i32, i32) {
    %c0_i32 = arith.constant 0 : i32
    %c0_i32_0 = arith.constant 0 : i32
    %c0_i32_1 = arith.constant 0 : i32
    return %arg0, %c0_i32, %c0_i32_0 : i32, i32, i32
  }
  func.func @transform_1(%arg0: i32) -> (i32, i32) {
    %c0_i32 = arith.constant 0 : i32
    %c0_i32_0 = arith.constant 0 : i32
    %c0_i32_1 = arith.constant 0 : i32
    return %c0_i32, %c0_i32_0 : i32, i32
  }
  func.func @transform_2(%arg0: i32) -> (i32, i32) {
    %c0_i32 = arith.constant 0 : i32
    %c0_i32_0 = arith.constant 0 : i32
    %c0_i32_1 = arith.constant 0 : i32
    return %c0_i32, %c0_i32_0 : i32, i32
  }
  func.func @transform_3(%arg0: i32) -> (i32, i32, i32) {
    %c0_i32 = arith.constant 0 : i32
    %c0_i32_0 = arith.constant 0 : i32
    %c0_i32_1 = arith.constant 0 : i32
    return %arg0, %c0_i32, %c0_i32_0 : i32, i32, i32
  }
}

</mosaic_0001>

<bundles_post_ra>
// kernel: tpu_custom_call.1
= control target key start
LH: loop header
LB: loop body
LE: loop exit
PB: predicated region body
PF: predicated region fallthrough
CT: control target
= control target key end

     0   :  { %8 = vsyncpa [#allocation4], 0  ;;  %s894_s0 = inlined_call_operand.hbm [shape: f32[4,16,128], index: 0, kind: input, shape index: {}]   ;;  %s895_s1 = inlined_call_operand.hbm [shape: f32[384,128], index: 1, kind: input, shape index: {}]   ;;  %s896_s2 = inlined_call_operand.vmem [shape: f32[1,128], index: 2, kind: input, shape index: {}]   ;;  %s897_s3 = inlined_call_operand.vmem [shape: f32[4,9,128], index: 3, kind: output, shape index: {}]  }
   0x1   :  { %10 = vsyncpa [#allocation4 + $0x1], 0 }
   0x2   :  { %11 = vsyncpa [#allocation6], 0  ;;  %s763_s12 = smov 0   ;;  %s765_s13 = smov 0  }
   0x3   :  { %s767_s14 = smov 0   ;;  %s769_s15 = smov 0  }
   0x4 LB: > { %s538_s16 = sadd.s32 4294967295, %s738_s15   ;;  %p37_p0 = scmp.ne.s32.totalorder %s730_s13, %s726_s12  ;;  %s738_s15 = sphi %s769_s15, %s905_s15   ;;  %s734_s14 = sphi %s767_s14, %s904_s14   ;;  %s730_s13 = sphi %s765_s13, %s903_s13   ;;  %s726_s12 = sphi %s763_s12, %s902_s12  }
   0x5   : > { %p785_p1 = scmp.eq.s32.totalorder %s538_s16, 0  ;;  %p540_p2 = scmp.ge.s32.totalorder %s738_s15, 1 }
   0x6   : > { %p116_p3 = scmp.lt.s32.totalorder %s738_s15, 3  ;;  %s127_s21 = sshll.u32 %s895_s1, 4  ;;  %s128_s21 = int_to_ptr.hbm [resolvable:$true] %s127_s21 }
   0x7   : > { %p793_p4 = por %p785_p1, %p37_p0  ;;  %s740_s23 = smov [#allocation5]  }
   0x8   : > { %p800_p5 = pnand %p540_p2, %p116_p3  ;;  %s129_s24 = sshll.u32 %s740_s23, 4  ;;  %s130_s24 = int_to_ptr.vmem [resolvable:$true] %s129_s24 }
   0x9   : > { %s809_s25 = sadd.s32 1, %s738_s15   ;;  %s741_s26 = smov 128  }
   0xa   : > { %p584_p6 = pneg %p800_p5  ;;  %s742_s27 = smov 8  }
   0xb   : > { %s21_s28 = ssub.s32 %s738_s15, %s809_s25  ;;  %s24_s29 = sadd.s32 1, %s734_s14 }
   0xc   : > { %p585_p7 = pnand %p584_p6, %p785_p1  ;;  %p22_p8 = scmp.eq.s32.totalorder %s21_s28, 0 }
   0xd   : > { %p31_p9 = scmp.ne.s32.totalorder %s734_s14, %s730_s13  ;;  %p32_p10 = scmp.eq.s32.totalorder %s738_s15, 0 }
   0xe   : > { %587 = dma.hbm_to_vmem [thread:$0]  (!%p585_p7), %s128_s21, 6144, %s130_s24, [#allocation6], %s741_s26, %s741_s26, %s742_s27  }
   0xf   : > { %p593_p11 = scmp.lt.s32.totalorder %s738_s15, 2  ;;  %p33_p12 = por %p32_p10, %p31_p9 }
  0x10   : > { %s822_s30 = scalar_select %p22_p8, %s734_s14, %s24_s29  }
  0x11   : > { %s146_s4 = sand.u32 1, %s734_s14   ;;  %s560_s6 = sshll.u32 %s738_s15, 5 }
  0x12   : > { %s543_s5 = sshll.u32 %s146_s4, 5  ;;  %s156_s9 = scalar_lea.hbm %s894_s0, %s560_s6 }
  0x13   : > { %s150_s10 = scalar_lea.vmem [#allocation3], %s543_s5  ;;  %s157_s12 = sshll.u32 %s156_s9, 4  ;;  %s158_s12 = int_to_ptr.hbm [resolvable:$true] %s157_s12 }
  0x14   : > { %s159_s11 = sshll.u32 %s150_s10, 4  ;;  %p829_p13 = pnand %p593_p11, %p33_p12  ;;  %s160_s11 = int_to_ptr.vmem [resolvable:$true] %s159_s11 }
  0x15   : > { %s147_s20 = scalar_lea.sflag [#allocation4], %s146_s4  ;;  %s670_s21 = sshra.s32 %s158_s12, 4  ;;  %s671_s21 = int_to_ptr.hbm [resolvable:$true] %s670_s21 }
  0x16   : > { %s672_s23 = scalar_lea.hbm %s671_s21, 32  ;;  %p674_p2 = pneg %p829_p13 }
  0x17   : > { %p673_p0 = scmp.ne.s32.totalorder %s671_s21, %s672_s23  ;;  %s677_s29 = scalar_lea.hbm %s894_s0, 64 }
  0x18   : > { %p678_p7 = scmp.lt.s32.totalorder %s671_s21, %s894_s0  ;;  %p679_p8 = scmp.lt.s32.totalorder %s677_s29, %s672_s23 }
  0x19   : > { %p675_p3 = pnand %p674_p2, %p673_p0 }
  0x1a   : > { %p680_p9 = por %p679_p8, %p678_p7 }
  0x1b   : > { %p676_p6 = pneg %p675_p3 }
  0x1d   : > { %p681_p10 = pnand %p680_p9, %p676_p6 }
  0x1f   : > { %684 = shalt.err (!%p681_p10)
}
  0x20   : > { %591 = dma.hbm_to_vmem [thread:$0]  (!%p829_p13), %s158_s12, 512, %s160_s11, %s147_s20, %s741_s26, %s741_s26, %s742_s27  }
  0x21   : > { %171 = sbr.rel (%p800_p5) target bundleno = 259 (0x103), region = 32  ;;  %s173_s4 = sand.u32 (!%p800_p5), 1, %s730_s13  }
  0x22   : > { %s548_s7 = sshll.u32 (!%p800_p5), %s173_s4, 5  ;;  %s174_s8 = scalar_lea.sflag (!%p800_p5), [#allocation4], %s173_s4 }
  0x23   : > { %s849_s9 = scalar_lea.vmem (!%p800_p5), [#allocation3], %s548_s7 }
  0x26   : > { %717 = dma.done.wait (%p793_p4), %s174_s8, 512  }
  0x27   : > { %719 = vsyncadd (%p793_p4), %s174_s8, 4294966784 }
  0x28   : > { %721 = dma.done.wait (%p785_p1), [#allocation6], 6144  }
  0x29   : > { %723 = vsyncadd (%p785_p1), [#allocation6], 4294961152  ;;  %v300_v0 = vld [vmem:[#allocation5 + $0x178] sm:$0xff]  ;;  %v299_v2 = vld [vmem:[#allocation5 + $0x170] sm:$0xff]  ;;  %vm227_vm0 = vcmask 1041408   ;;  %vm242_vm1 = vcmask 1040384  }
  0x2a   : > { %v268_v1 = vld [vmem:[#allocation5 + $0x78] sm:$0xff]  ;;  %363 = vmatpush.msra.mxu2 %v300_v0  ;;  %v267_v3 = vld [vmem:[#allocation5 + $0x70] sm:$0xff]  ;;  %v298_v5 = vld [vmem:[#allocation5 + $0x168] sm:$0xff]  ;;  %s550_s22 = sshll.u32 %s538_s16, 1 }
  0x2b   : > { %305 = vmatpush.msra.mxu0 %v268_v1  ;;  %v284_v4 = vld [vmem:[#allocation5 + $0xf8] sm:$0xff]  ;;  %562 = vmatpush.msra.mxu3 %v268_v1  ;;  %v266_v6 = vld [vmem:[#allocation5 + $0x68] sm:$0xff]  ;;  %v283_v7 = vld [vmem:[#allocation5 + $0xf0] sm:$0xff]  ;;  %p209_p1 = scmp.lt.s32.totalorder %s550_s22, 3 }
  0x2c   : > { %334 = vmatpush.msra.mxu1 %v284_v4  ;;  %364 = vmatpush.msra.mxu2 %v299_v2  ;;  %v282_v8 = vld [vmem:[#allocation5 + $0xe8] sm:$0xff]  ;;  %v297_v9 = vld [vmem:[#allocation5 + $0x160] sm:$0xff]  ;;  %v296_v12 = vld [vmem:[#allocation5 + $0x158] sm:$0xff] }
  0x2d   : > { %306 = vmatpush.msra.mxu0 %v267_v3  ;;  %563 = vmatpush.msra.mxu3 %v267_v3  ;;  %v265_v10 = vld [vmem:[#allocation5 + $0x60] sm:$0xff]  ;;  %v264_v13 = vld [vmem:[#allocation5 + $0x58] sm:$0xff]  ;;  %v295_v15 = vld [vmem:[#allocation5 + $0x150] sm:$0xff]  ;;  %s907_s22 = smov (!%p209_p1, %s550_s22), 3 }
  0x2e   : > { %335 = vmatpush.msra.mxu1 %v283_v7  ;;  %365 = vmatpush.msra.mxu2 %v298_v5  ;;  %v281_v11 = vld [vmem:[#allocation5 + $0xe0] sm:$0xff]  ;;  %v280_v14 = vld [vmem:[#allocation5 + $0xd8] sm:$0xff]  ;;  %v263_v16 = vld [vmem:[#allocation5 + $0x50] sm:$0xff]  ;;  %s561_s15 = sshll.u32 %s907_s22, 4 }
  0x2f   : > { %307 = vmatpush.msra.mxu0 %v266_v6  ;;  %564 = vmatpush.msra.mxu3 %v266_v6  ;;  %v279_v17 = vld [vmem:[#allocation5 + $0xd0] sm:$0xff]  ;;  %v294_v18 = vld [vmem:[#allocation5 + $0x148] sm:$0xff]  ;;  %v293_v21 = vld [vmem:[#allocation5 + $0x140] sm:$0xff]  ;;  %s213_s27 = scalar_lea.vmem %s897_s3, %s561_s15 }
  0x30   : > { %336 = vmatpush.msra.mxu1 %v282_v8  ;;  %366 = vmatpush.msra.mxu2 %v297_v9  ;;  %v262_v19 = vld [vmem:[#allocation5 + $0x48] sm:$0xff]  ;;  %v261_v22 = vld [vmem:[#allocation5 + $0x40] sm:$0xff]  ;;  %v292_v24 = vld [vmem:[#allocation5 + $0x138] sm:$0xff] }
  0x31   : > { %308 = vmatpush.msra.mxu0 %v265_v10  ;;  %565 = vmatpush.msra.mxu3 %v265_v10  ;;  %v278_v20 = vld [vmem:[#allocation5 + $0xc8] sm:$0xff]  ;;  %v277_v23 = vld [vmem:[#allocation5 + $0xc0] sm:$0xff]  ;;  %v260_v25 = vld [vmem:[#allocation5 + $0x38] sm:$0xff] }
  0x32   : > { %337 = vmatpush.msra.mxu1 %v281_v11  ;;  %367 = vmatpush.msra.mxu2 %v296_v12  ;;  %v276_v26 = vld [vmem:[#allocation5 + $0xb8] sm:$0xff]  ;;  %v291_v27 = vld [vmem:[#allocation5 + $0x130] sm:$0xff]  ;;  %v290_v30 = vld [vmem:[#allocation5 + $0x128] sm:$0xff] }
  0x33   : > { %309 = vmatpush.msra.mxu0 %v264_v13  ;;  %566 = vmatpush.msra.mxu3 %v264_v13  ;;  %v259_v28 = vld [vmem:[#allocation5 + $0x30] sm:$0xff]  ;;  %v258_v31 = vld [vmem:[#allocation5 + $0x28] sm:$0xff]  ;;  %v289_v33 = vld [vmem:[#allocation5 + $0x120] sm:$0xff] }
  0x34   : > { %338 = vmatpush.msra.mxu1 %v280_v14  ;;  %368 = vmatpush.msra.mxu2 %v295_v15  ;;  %v275_v29 = vld [vmem:[#allocation5 + $0xb0] sm:$0xff]  ;;  %v274_v32 = vld [vmem:[#allocation5 + $0xa8] sm:$0xff]  ;;  %v257_v34 = vld [vmem:[#allocation5 + $0x20] sm:$0xff] }
  0x35   : > { %310 = vmatpush.msra.mxu0 %v263_v16  ;;  %567 = vmatpush.msra.mxu3 %v263_v16  ;;  %v288_v35 = vld [vmem:[#allocation5 + $0x118] sm:$0xff]  ;;  %v273_v36 = vld [vmem:[#allocation5 + $0xa0] sm:$0xff]  ;;  %v216_v39 = vld [vmem:[%s849_s9 + $0x8] sm:$0xff] }
  0x36   : > { %339 = vmatpush.msra.mxu1 %v279_v17  ;;  %369 = vmatpush.msra.mxu2 %v294_v18  ;;  %v256_v37 = vld [vmem:[#allocation5 + $0x18] sm:$0xff]  ;;  %v215_v38 = vld [vmem:[%s849_s9] sm:$0xff]  ;;  %v287_v41 = vld [vmem:[#allocation5 + $0x110] sm:$0xff]  ;;  %v221_v45 = vrot.slane %v216_v39, 6  ;;  %v238_v50 = vrot.slane %v216_v39, 7 }
  0x37   : > { %311 = vmatpush.msra.mxu0 %v262_v19  ;;  %568 = vmatpush.msra.mxu3 %v262_v19  ;;  %v272_v40 = vld [vmem:[#allocation5 + $0x98] sm:$0xff]  ;;  %v255_v42 = vld [vmem:[#allocation5 + $0x10] sm:$0xff]  ;;  %v228_v44 = vrot.slane %v215_v38, 6  ;;  %v286_v46 = vld [vmem:[#allocation5 + $0x108] sm:$0xff]  ;;  %v243_v48 = vrot.slane %v215_v38, 7 }
  0x38   : > { %340 = vmatpush.msra.mxu1 %v278_v20  ;;  %370 = vmatpush.msra.mxu2 %v293_v21  ;;  %v271_v43 = vld [vmem:[#allocation5 + $0x90] sm:$0xff]  ;;  %v254_v47 = vld [vmem:[#allocation5 + $0x8] sm:$0xff]  ;;  %v285_v51 = vld [vmem:[#allocation5 + $0x100] sm:$0xff] }
  0x39   : > { %312 = vmatpush.msra.mxu0 %v261_v22  ;;  %569 = vmatpush.msra.mxu3 %v261_v22  ;;  %v270_v49 = vld [vmem:[#allocation5 + $0x88] sm:$0xff]  ;;  %v253_v52 = vld [vmem:[#allocation5] sm:$0xff]  ;;  %v236_v53 = vsel %vm227_vm0, %v221_v45, %v228_v44  ;;  %v229_v55 = vsel %vm227_vm0, %v228_v44, %v221_v45  ;;  %v251_v56 = vsel %vm242_vm1, %v238_v50, %v243_v48  ;;  %v217_v57 = vld [vmem:[%s849_s9 + $0x10] sm:$0xff] }
  0x3a   : > { %341 = vmatpush.msra.mxu1 %v277_v23  ;;  %371 = vmatpush.msra.mxu2 %v292_v24  ;;  %v269_v54 = vld [vmem:[#allocation5 + $0x80] sm:$0xff]  ;;  %v218_v58 = vld [vmem:[%s849_s9 + $0x18] sm:$0xff]  ;;  %v230_v60 = vrot.slane %v217_v57, 6  ;;  %v244_v62 = vsel %vm242_vm1, %v243_v48, %v238_v50  ;;  %v245_v0 = vrot.slane %v217_v57, 7  ;;  %v631_v4 = vld [vmem:[%s896_s2] ss:$0 sm:$0xff] }
  0x3b   : > { %313 = vmatpush.msra.mxu0 %v260_v25  ;;  %570 = vmatpush.msra.mxu3 %v260_v25  ;;  %v222_v59 = vrot.slane %v218_v58, 6  ;;  %v239_v63 = vrot.slane %v218_v58, 7 }
  0x3c   : > { %342 = vmatpush.msra.mxu1 %v276_v26  ;;  %372 = vmatpush.msra.mxu2 %v291_v27 }
  0x3d   : > { %314 = vmatpush.msra.mxu0 %v259_v28  ;;  %571 = vmatpush.msra.mxu3 %v259_v28  ;;  %v237_v61 = vsel %vm227_vm0, %v222_v59, %v230_v60  ;;  %v231_v1 = vsel %vm227_vm0, %v230_v60, %v222_v59  ;;  %v252_v2 = vsel %vm242_vm1, %v239_v63, %v245_v0 }
  0x3e   : > { %343 = vmatpush.msra.mxu1 %v275_v29  ;;  %373 = vmatpush.msra.mxu2 %v290_v30  ;;  %v246_v3 = vsel %vm242_vm1, %v245_v0, %v239_v63 }
  0x3f   : > { %315 = vmatpush.msra.mxu0 %v258_v31  ;;  %572 = vmatpush.msra.mxu3 %v258_v31 }
  0x40   : > { %344 = vmatpush.msra.mxu1 %v274_v32  ;;  %374 = vmatpush.msra.mxu2 %v289_v33 }
  0x41   : > { %316 = vmatpush.msra.mxu0 %v257_v34  ;;  %573 = vmatpush.msra.mxu3 %v257_v34 }
  0x42   : > { %345 = vmatpush.msra.mxu1 %v273_v36  ;;  %375 = vmatpush.msra.mxu2 %v288_v35 }
  0x43   : > { %317 = vmatpush.msra.mxu0 %v256_v37  ;;  %574 = vmatpush.msra.mxu3 %v256_v37 }
  0x44   : > { %346 = vmatpush.msra.mxu1 %v272_v40  ;;  %376 = vmatpush.msra.mxu2 %v287_v41 }
  0x45   : > { %318 = vmatpush.msra.mxu0 %v255_v42  ;;  %575 = vmatpush.msra.mxu3 %v255_v42 }
  0x46   : > { %347 = vmatpush.msra.mxu1 %v271_v43  ;;  %377 = vmatpush.msra.mxu2 %v286_v46 }
  0x47   : > { %319 = vmatpush.msra.mxu0 %v254_v47  ;;  %576 = vmatpush.msra.mxu3 %v254_v47 }
  0x48   : > { %348 = vmatpush.msra.mxu1 %v270_v49  ;;  %378 = vmatpush.msra.mxu2 %v285_v51 }
  0x49   : > { %320 = vmatpush.msra.mxu0 %v253_v52  ;;  %379 = vmatmul.f32.vlgmr.msra.gmra.mxu2 %v215_v38 }
  0x4a   : > { %321 = vmatmul.f32.vlgmr.msra.gmra.mxu0 %v236_v53  ;;  %577 = vmatpush.msra.mxu3 %v253_v52 }
  0x4b   : > { %349 = vmatpush.msra.mxu1 %v269_v54  ;;  %324 = vmatmul.f32.vlgmr.msra.gmra.mxu3 %v229_v55 }
  0x4c   : > { %350 = vmatmul.f32.vlgmr.msra.gmra.mxu1 %v251_v56 }
  0x51   : > { %382 = vmatmul.f32.gmra.mxu2 %v216_v39 }
  0x53   : > { %327 = vmatmul.f32.gmra.mxu3 %v237_v61 }
  0x54   : > { %353 = vmatmul.f32.gmra.mxu1 %v244_v62 }
  0x59   : > { %385 = vmatmul.f32.gmra.mxu2 %v217_v57 }
  0x5b   : > { %330 = vmatmul.f32.gmra.mxu3 %v231_v1 }
  0x5c   : > { %356 = vmatmul.f32.gmra.mxu1 %v252_v2 }
  0x61   : > { %388 = vmatmul.f32.gmra.mxu2 %v218_v58 }
  0x64   : > { %359 = vmatmul.f32.gmra.mxu1 %v246_v3 }
  0xc7   : > { %v322_v5 = vpop.f32.mrf.mxu0 }
  0xc8   : > { %v323_v6 = vadd.f32 %v631_v4, %v322_v5 }
  0xc9   : > { %v351_v7 = vpop.f32.mrf.mxu1 }
  0xca   : > { %v352_v8 = vadd.f32 %v351_v7, %v323_v6 }
  0xcc   : > { %v380_v9 = vpop.f32.mrf.mxu2 }
  0xcd   : > { %v381_v10 = vadd.f32 %v380_v9, %v352_v8 }
  0xce   : > { %v325_v11 = vpop.f32.mrf.mxu3 }
  0xcf   : > { %v396_v12 = vmin.f32 %v381_v10, 0.0  ;;  %v326_v13 = vadd.f32 %v631_v4, %v325_v11  ;;  %vm392_vm2 = vcmp.gt.f32.partialorder %v381_v10, 0.0 }
  0xd1   : > { %v354_v14 = vpop.f32.mrf.mxu1  ;;  %v400_v15 = vmul.f32 1.442695, %v396_v12 }
  0xd2   : > { %v355_v16 = vadd.f32 %v354_v14, %v326_v13 }
  0xd3   : > { %632 = vpow2.f32 %v400_v15 }
  0xd4   : > { %v383_v17 = vpop.f32.mrf.mxu2 }
  0xd5   : > { %v384_v18 = vadd.f32 %v383_v17, %v355_v16 }
  0xd6   : > { %v328_v19 = vpop.f32.mrf.mxu3 }
  0xd7   : > { %v397_v20 = vmin.f32 %v384_v18, 0.0  ;;  %v329_v21 = vadd.f32 %v631_v4, %v328_v19  ;;  %vm393_vm3 = vcmp.gt.f32.partialorder %v384_v18, 0.0 }
  0xd9   : > { %v357_v22 = vpop.f32.mrf.mxu1  ;;  %v633_v23 = vpop.eup %632  ;;  %v402_v24 = vmul.f32 1.442695, %v397_v20 }
  0xda   : > { %v358_v25 = vadd.f32 %v357_v22, %v329_v21  ;;  %v553_v26 = vadd.f32 -1.0, %v633_v23 }
  0xdb   : > { %634 = vpow2.f32 %v402_v24 }
  0xdc   : > { %v412_v27 = vsel %vm392_vm2, %v381_v10, %v553_v26  ;;  %v386_v28 = vpop.f32.mrf.mxu2 }
  0xdd   : > { %416 = vst [vmem:[#allocation2] sm:$0xff] %v412_v27  ;;  %v387_v29 = vadd.f32 %v386_v28, %v358_v25 }
  0xde   : > { %420 = vst [vmem:[#allocation2 + $0x10] sm:$0x3] %v412_v27  ;;  %v331_v30 = vpop.f32.mrf.mxu3 }
  0xdf   : > { %v398_v31 = vmin.f32 %v387_v29, 0.0  ;;  %v332_v32 = vadd.f32 %v631_v4, %v331_v30  ;;  %vm394_vm4 = vcmp.gt.f32.partialorder %v387_v29, 0.0 }
  0xe1   : > { %v360_v33 = vpop.f32.mrf.mxu1  ;;  %v635_v34 = vpop.eup %634  ;;  %v404_v35 = vmul.f32 1.442695, %v398_v31 }
  0xe2   : > { %v361_v36 = vadd.f32 %v360_v33, %v332_v32  ;;  %v554_v37 = vadd.f32 -1.0, %v635_v34 }
  0xe3   : > { %636 = vpow2.f32 %v404_v35 }
  0xe4   : > { %v413_v38 = vsel %vm393_vm3, %v384_v18, %v554_v37  ;;  %v389_v39 = vpop.f32.mrf.mxu2 }
  0xe5   : > { %v390_v40 = vadd.f32 %v389_v39, %v361_v36  ;;  %417 = vst [vmem:[#allocation2 + $0x8] sm:$0xff] %v413_v38  ;;  %v426_v45 = vld [vmem:[#allocation2 + $0x10] ss:$2 sm:$0x1] }
  0xe6   : > { %v434_v46 = vld [vmem:[#allocation2 + $0x11] ss:$2 sm:$0x1] }
  0xe7   : > { %v399_v41 = vmin.f32 %v390_v40, 0.0  ;;  %v440_v50 = vmax.f32 %v426_v45, %v434_v46  ;;  %vm395_vm5 = vcmp.gt.f32.partialorder %v390_v40, 0.0 }
  0xe9   : > { %v637_v42 = vpop.eup %636  ;;  %v406_v43 = vmul.f32 1.442695, %v399_v41 }
  0xea   : > { %v555_v44 = vadd.f32 -1.0, %v637_v42 }
  0xeb   : > { %638 = vpow2.f32 %v406_v43 }
  0xec   : > { %v414_v47 = vsel %vm394_vm4, %v387_v29, %v555_v44  ;;  %v424_v48 = vld [vmem:[#allocation2] ss:$2 sm:$0xff]  ;;  %v432_v49 = vld [vmem:[#allocation2 + $0x1] ss:$2 sm:$0xff] }
  0xed   : > { %418 = vst [vmem:[#allocation2 + $0x18] sm:$0xff] %v414_v47  ;;  %v439_v51 = vmax.f32 %v424_v48, %v432_v49  ;;  %v445_v52 = vrot.slane %v432_v49, 7 }
  0xee   : > { %421 = vst [vmem:[#allocation2 + $0x28] sm:$0x3] %v414_v47 }
  0xef   : > { %v449_v53 = vsel %vm242_vm1, %v439_v51, %v445_v52  ;;  %v452_v54 = vmax.f32 %v440_v50, %v445_v52 }
  0xf0   : > { %v451_v56 = vmax.f32 %v439_v51, %v449_v53 }
  0xf1   : > { %v639_v55 = vpop.eup %638  ;;  %456 = vst [vmem:[%s213_s27 + $0x8] sm:$0x1] %v452_v54 }
  0xf2   : > { %v556_v57 = vadd.f32 -1.0, %v639_v55  ;;  %455 = vst [vmem:[%s213_s27] sm:$0xff] %v451_v56 }
  0xf4   : > { %v415_v58 = vsel %vm395_vm5, %v390_v40, %v556_v57 }
  0xf5   : > { %419 = vst [vmem:[#allocation2 + $0x20] sm:$0xff] %v415_v58  ;;  %v430_v59 = vld [vmem:[#allocation2 + $0x28] ss:$2 sm:$0x1] }
  0xf6   : > { %v438_v60 = vld [vmem:[#allocation2 + $0x29] ss:$2 sm:$0x1] }
  0xf7   : > { %v442_v63 = vmax.f32 %v430_v59, %v438_v60 }
  0xfc   : > { %v428_v61 = vld [vmem:[#allocation2 + $0x18] ss:$2 sm:$0xff]  ;;  %v436_v62 = vld [vmem:[#allocation2 + $0x19] ss:$2 sm:$0xff] }
  0xfd   : > { %v441_v0 = vmax.f32 %v428_v61, %v436_v62  ;;  %v446_v1 = vrot.slane %v436_v62, 7 }
  0xff   : > { %v450_v2 = vsel %vm242_vm1, %v441_v0, %v446_v1  ;;  %v454_v3 = vmax.f32 %v442_v63, %v446_v1 }
 0x100   : > { %v453_v4 = vmax.f32 %v441_v0, %v450_v2 }
 0x101   : > { %458 = vst [vmem:[%s213_s27 + $0x18] sm:$0x1] %v454_v3 }
 0x102   : > { %457 = vst [vmem:[%s213_s27 + $0x10] sm:$0xff] %v453_v4 }
 0x103 PF: > { %p14_p4 = scmp.ge.s32.totalorder %s809_s25, 4   ;;  %s902_s12 = smov %s730_s13 }
 0x104   : > { %s903_s13 = smov %s734_s14  ;;  %s904_s14 = smov %s822_s30 }
 0x105   : > { %s905_s15 = smov %s809_s25  ;;  %16 = sbr.rel (!%p14_p4) target bundleno = 4 (0x4), region = 83 }
 0x10a   :  { %483 = vsyncpa [#allocation4], 1 }
 0x10b   :  { %485 = vsyncpa [#allocation4 + $0x1], 1 }
 0x10c   :  { %486 = vsyncpa [#allocation6], 1 }

</bundles_post_ra>
